<compile_context>
chip_gen: v5e
topology: v5e:2x2
jax: 0.10.0
libtpu: 0.0.40
codegen_flags: <defaults>
</compile_context>

<pallas_src>
import jax
import jax.numpy as jnp
from jax.experimental import pallas as pl
from jax.experimental.pallas import tpu as pltpu


# Lanes per grid step in the packed (8, tile) f32 layout:
# 8 * 65536 * 4 B = 2 MiB per buffer; with in+out double buffering ~8 MiB,
# safely inside the scoped VMEM default on v5e (16 MiB), v6e (32 MiB) and
# v7x (32 MiB scoped / 64 MiB physical).
_TILE_N = 65536


def _pick_tile(m: int, max_tile: int) -> int:
    """Column-tile size (lanes) for an array whose last dim is m."""
    if m <= 1024:
        # Single full-extent block; splitting tiny transfers only adds the
        # per-grid-step overhead.
        return m
    # Prefer >= 2 lane-dense tiles so the "parallel" grid axis can be sharded
    # across v7x's two TensorCores, capped by the per-buffer VMEM budget.
    half = -(-m // 2)
    tile = ((half + 127) // 128) * 128
    return min(tile, max_tile)


def _cnot_packed_kernel(x_ref, o_ref):
    # x_ref / o_ref: (8, tile) f32 block holding original rows 2 and 3,
    # packed four sublanes per row (row 2 -> sublanes 0..3, row 3 -> 4..7).
    # Swapping rows 2 and 3 == rotating the 8 sublanes by 4: one unmasked
    # load, one XLU rotate, one unmasked store per vreg.
    o_ref[...] = pltpu.roll(x_ref[...], shift=4, axis=0)


def _cnot_rows_kernel(x_ref, o_ref):
    # Fallback: (4, tile) block, explicit row permutation with the dtype cast
    # folded into the kernel (no separate XLA astype pass over HBM).
    o_ref[0:2, :] = x_ref[0:2, :].astype(o_ref.dtype)
    o_ref[2:3, :] = x_ref[3:4, :].astype(o_ref.dtype)
    o_ref[3:4, :] = x_ref[2:3, :].astype(o_ref.dtype)


def _cnot_packed(x: jax.Array, tile_n: int) -> jax.Array:
    """Fast path: float32 (4, N) with N % 4 == 0."""
    n = x.shape[1]
    m = n // 4
    xp = x.reshape(16, m)                      # free row-major reinterpret
    tile = _pick_tile(m, tile_n)
    num_tiles = pl.cdiv(m, tile)               # ragged last tile is masked

    out = pl.pallas_call(
        _cnot_packed_kernel,
        out_shape=jax.ShapeDtypeStruct((16, m), jnp.float32),
        grid=(num_tiles,),
        # Only the sublane band 8..15 (original rows 2 and 3) is streamed;
        # the leading block index is pinned to 1.
        in_specs=[pl.BlockSpec((8, tile), lambda i: (1, i))],
        out_specs=pl.BlockSpec((8, tile), lambda i: (1, i)),
        # Rows 0 and 1 are identity: alias the output onto the input so they
        # are never touched.  (Full savings require a donatable input buffer;
        # otherwise XLA inserts a copy, which is still correct.)
        input_output_aliases={0: 0},
        compiler_params=pltpu.CompilerParams(
            dimension_semantics=("parallel",),
        ),
        # Pure bandwidth op: read + write of rows 2 and 3 only.
        cost_estimate=pl.CostEstimate(
            flops=0, transcendentals=0,
            bytes_accessed=int(2 * 8 * m * 4)),
    )(xp)
    return out.reshape(4, n)


def _cnot_rows(x: jax.Array, tile_n: int) -> jax.Array:
    """Fallback path: any dtype, any N >= 1."""
    n = x.shape[1]
    tile = _pick_tile(n, tile_n)
    num_tiles = pl.cdiv(n, tile)
    itemsize = x.dtype.itemsize
    return pl.pallas_call(
        _cnot_rows_kernel,
        out_shape=jax.ShapeDtypeStruct((4, n), jnp.float32),
        grid=(num_tiles,),
        in_specs=[pl.BlockSpec((4, tile), lambda i: (0, i))],
        out_specs=pl.BlockSpec((4, tile), lambda i: (0, i)),
        compiler_params=pltpu.CompilerParams(
            dimension_semantics=("parallel",),
        ),
        cost_estimate=pl.CostEstimate(
            flops=0, transcendentals=0,
            bytes_accessed=int(4 * n * (itemsize + 4))),
    )(x)


def _cnot_apply(x: jax.Array, tile_n: int = _TILE_N) -> jax.Array:
    """Apply the CNOT gate to x of shape (4, N); returns (4, N) float32."""
    assert x.ndim == 2 and x.shape[0] == 4, "x must have shape (4, N)"
    n = x.shape[1]
    if n == 0:
        return jnp.zeros((4, 0), jnp.float32)
    if n % 4 == 0 and x.dtype == jnp.float32:
        return _cnot_packed(x, tile_n)
    return _cnot_rows(x, tile_n)


cnot_apply = jax.jit(_cnot_apply, static_argnames=("tile_n",))


if __name__ == "__main__":
    key = jax.random.PRNGKey(0)
    k0, k1, k2 = jax.random.split(key, 3)
    matrix = jnp.array(
        [[1, 0, 0, 0], [0, 1, 0, 0], [0, 0, 0, 1], [0, 0, 1, 0]],
        dtype=jnp.float32,
    )

    # 256 independent 2-qubit state vectors as columns (packed fast path,
    # single block).
    x = jax.random.normal(k0, (4, 256), dtype=jnp.float32)
    out = jax.block_until_ready(cnot_apply(x))
    ref = jnp.matmul(matrix, x, precision=jax.lax.Precision.HIGHEST)
    assert out.shape == ref.shape and out.dtype == ref.dtype
    assert jnp.allclose(out, ref, atol=1e-6), "packed-path mismatch vs reference"

    # Multi-tile packed path with a ragged (masked) last block.
    x2 = jax.random.normal(k1, (4, 10400), dtype=jnp.float32)
    out2 = jax.block_until_ready(cnot_apply(x2))
    ref2 = jnp.matmul(matrix, x2, precision=jax.lax.Precision.HIGHEST)
    assert jnp.allclose(out2, ref2, atol=1e-6), "multi-tile mismatch vs reference"

    # Fallback path (N not divisible by 4).
    x3 = jax.random.normal(k2, (4, 250), dtype=jnp.float32)
    out3 = jax.block_until_ready(cnot_apply(x3))
    ref3 = jnp.matmul(matrix, x3, precision=jax.lax.Precision.HIGHEST)
    assert jnp.allclose(out3, ref3, atol=1e-6), "fallback-path mismatch vs reference"

    print("KERNEL_OK")
</pallas_src>

<mosaic_0001>
module attributes {stable_mosaic.version = 11 : i64} {
  func.func @_cnot_packed_kernel(%arg0: i32, %arg1: memref<8x64xf32, #tpu.memory_space<vmem>>, %arg2: memref<8x64xf32, #tpu.memory_space<vmem>>) attributes {dimension_semantics = [#tpu.dimension_semantics<parallel>], iteration_bounds = array<i64: 1>, scalar_prefetch = 0 : i64, scratch_operands = 0 : i64, tpu.core_type = #tpu.core_type<tc>, window_params = [{transform_indices = @transform_0, window_bounds = array<i64: 8, 64>}, {transform_indices = @transform_1, window_bounds = array<i64: 8, 64>}]} {
    %c0 = arith.constant 0 : index
    %c0_0 = arith.constant 0 : index
    %0 = vector.load %arg1[%c0, %c0_0] : memref<8x64xf32, #tpu.memory_space<vmem>>, vector<8x64xf32>
    %c4_i32 = arith.constant 4 : i32
    %1 = tpu.dynamic_rotate %0 by %c4_i32 dim 0 : vector<8x64xf32>, i32 -> vector<8x64xf32>
    %c0_1 = arith.constant 0 : index
    %c0_2 = arith.constant 0 : index
    %2 = vector.load %arg2[%c0_1, %c0_2] : memref<8x64xf32, #tpu.memory_space<vmem>>, vector<8x64xf32>
    tpu.vector_store %arg2[%c0_1, %c0_2], %1 {strides = array<i32>} : memref<8x64xf32, #tpu.memory_space<vmem>>, vector<8x64xf32>,
    return
  }
  func.func @transform_0(%arg0: i32) -> (i32, i32) {
    %c1_i32 = arith.constant 1 : i32
    %c0_i32 = arith.constant 0 : i32
    return %c1_i32, %arg0 : i32, i32
  }
  func.func @transform_1(%arg0: i32) -> (i32, i32) {
    %c1_i32 = arith.constant 1 : i32
    %c0_i32 = arith.constant 0 : i32
    return %c1_i32, %arg0 : i32, i32
  }
}

</mosaic_0001>

<bundles_post_ra>
// kernel: _cnot_apply.1
= control target key start
LH: loop header
LB: loop body
LE: loop exit
PB: predicated region body
PF: predicated region fallthrough
CT: control target
= control target key end

     0   :  { %vm15_vm0 = vcmask 523264   ;;  %s41_s0 = inlined_call_operand.vmem [shape: f32[16,64], index: 0, kind: input, shape index: {}, may-alias: {0,1}]   ;;  %s42_s1 = inlined_call_operand.vmem [shape: f32[16,64], index: 1, kind: output, shape index: {}, may-alias: {0,1}]  }
   0x1   :  { %v23_v0 = vld [vmem:[%s41_s0 + $0x8] sm:$0xff] }
   0x2   :  { %v14_v1 = vrot.slane %v23_v0, 4 }
   0x4   :  { %24 = vst.msk [vmem:[%s42_s1 + $0x8] sm:$0xff] %vm15_vm0, %v14_v1 }

</bundles_post_ra>
